<compile_context>
chip_gen: v6e
topology: v6e:2x2x1
jax: 0.10.0
libtpu: 0.0.40
codegen_flags: <defaults>
</compile_context>

<pallas_src>
import functools

import jax
import jax.numpy as jnp
from jax.experimental import pallas as pl
from jax.experimental.pallas import tpu as pltpu

GAMMA = 2  # module default


def _make_focal_kernel(hw, thw, needs_mask):
    def kernel(x_ref, t_ref, a_ref, acc_ref):
        s = pl.program_id(1)

        x = x_ref[0].astype(jnp.float32)       # (C, thw)  classes on sublanes
        t = t_ref[0]                           # (1, thw)  int32, lane-dense
        a = a_ref[...].astype(jnp.float32)     # (C, 1)
        c = x.shape[0]

        # numerically stable softmax pieces, reduced over the class (sublane) axis
        m = jnp.max(x, axis=0, keepdims=True)          # (1, thw)
        z = x - m                                      # (C, thw)
        e = jnp.exp(z)                                 # (C, thw)   C exps / pixel
        sumexp = jnp.sum(e, axis=0, keepdims=True)     # (1, thw)

        # one-hot gather of the target class via sublane iota vs lane-dense targets
        cls = jax.lax.broadcasted_iota(jnp.int32, (c, thw), 0)
        onehot = (cls == t).astype(jnp.float32)        # (C, thw)

        z_t = jnp.sum(z * onehot, axis=0, keepdims=True)   # (1, thw)
        e_t = jnp.sum(e * onehot, axis=0, keepdims=True)   # (1, thw) = exp(z_t) (reused)
        at = jnp.sum(a * onehot, axis=0, keepdims=True)    # (1, thw)

        logpt = z_t - jnp.log(sumexp)                      # (1, thw)
        pt = e_t / sumexp                                  # (1, thw)  no second exp

        one_m_pt = 1.0 - pt
        # matches torch ordering: pt computed BEFORE alpha scaling of logpt,
        # gamma=2 kept as an integer power (plain multiply).
        loss = -(one_m_pt * one_m_pt) * (at * logpt)       # (1, thw)

        if needs_mask:
            # zero out spatial padding lanes of the last partial block
            lane = jax.lax.broadcasted_iota(jnp.int32, (1, thw), 1)
            loss = jnp.where(s * thw + lane < hw, loss, 0.0)

        @pl.when(s == 0)
        def _():
            acc_ref[...] = jnp.zeros_like(acc_ref)

        acc_ref[...] += loss[None]                         # (1, 1, thw) resident acc

    return kernel


def focal_loss(logits_nchw, target_nhw, alpha, *, size_average=True, max_thw=32768):
    """logits: (B, C, H, W), target: (B, H, W) int, alpha: (C,)."""
    B, C, H, W = logits_nchw.shape
    HW = H * W
    M = B * HW

    # NCHW already has H*W contiguous per class: pure reshape, no transpose pass.
    x = logits_nchw.reshape(B, C, HW)
    t = target_nhw.reshape(B, 1, HW).astype(jnp.int32)
    a = alpha.reshape(C, 1).astype(jnp.float32)

    # spatial tile: whole H*W if it fits, else a large multiple of 128
    if HW <= max_thw:
        thw = HW                       # full-dim block is always a legal block size
    else:
        thw = max_thw                  # multiple of 128
    sb = pl.cdiv(HW, thw)
    needs_mask = (HW % thw) != 0

    kernel = _make_focal_kernel(hw=HW, thw=thw, needs_mask=needs_mask)

    partials = pl.pallas_call(
        kernel,
        out_shape=jax.ShapeDtypeStruct((B, 1, thw), jnp.float32),
        grid_spec=pltpu.PrefetchScalarGridSpec(
            num_scalar_prefetch=0,
            grid=(B, sb),
            in_specs=[
                pl.BlockSpec((1, C, thw), lambda b, s: (b, 0, s)),  # logits
                pl.BlockSpec((1, 1, thw), lambda b, s: (b, 0, s)),  # targets (lane-dense)
                pl.BlockSpec((C, 1), lambda b, s: (0, 0)),          # alpha (replicated)
            ],
            out_specs=pl.BlockSpec((1, 1, thw), lambda b, s: (b, 0, 0)),  # per-batch partials
        ),
        compiler_params=pltpu.CompilerParams(
            dimension_semantics=("parallel", "arbitrary")),
    )(x, t, a)

    # single tiny cross-lane reduce outside the hot loop (also better summation
    # accuracy than a running scalar for large M).
    total = jnp.sum(partials)
    # TODO(synk): out-of-range / ignore-index targets silently contribute 0 here
    # (torch's gather would wrap/clamp); they never occur for valid class labels.
    return total / M if size_average else total


def focal_loss_ref(logits_nchw, target_nhw, alpha, *, size_average=True):
    """Pure-JAX reference mirroring the PyTorch forward."""
    B, C, H, W = logits_nchw.shape
    x = jnp.transpose(logits_nchw, (0, 2, 3, 1)).reshape(-1, C)
    t = target_nhw.reshape(-1)
    logp = jax.nn.log_softmax(x, axis=1)
    logpt = jnp.take_along_axis(logp, t[:, None], axis=1)[:, 0]
    pt = jnp.exp(logpt)
    at = alpha[t]
    loss = -((1.0 - pt) ** GAMMA) * (at * logpt)
    return jnp.mean(loss) if size_average else jnp.sum(loss)


if __name__ == "__main__":
    key = jax.random.PRNGKey(0)
    B, C, H, W = 2, 4, 16, 16
    k1, k2 = jax.random.split(key)
    logits = jax.random.normal(k1, (B, C, H, W), dtype=jnp.float32)
    target = jax.random.randint(k2, (B, H, W), 0, C, dtype=jnp.int32)

    # deterministic "class_weights"; alpha = alpha_scalar * (1 - class_weights)
    class_weights = jnp.array([0.1, 0.2, 0.3, 0.4], dtype=jnp.float32)
    alpha = 0.25 * (1.0 - class_weights)

    out = focal_loss(logits, target, alpha)
    out = jax.block_until_ready(out)

    ref = focal_loss_ref(logits, target, alpha)
    assert jnp.allclose(out, ref, rtol=1e-5, atol=1e-6), (out, ref)
    print("KERNEL_OK")
</pallas_src>

<mosaic_0001>
module attributes {stable_mosaic.version = 11 : i64} {
  func.func @kernel(%arg0: i32, %arg1: i32, %arg2: memref<1x4x256xf32, #tpu.memory_space<vmem>>, %arg3: memref<1x1x256xi32, #tpu.memory_space<vmem>>, %arg4: memref<4x1xf32, #tpu.memory_space<vmem>>, %arg5: memref<1x1x256xf32, #tpu.memory_space<vmem>>) attributes {dimension_semantics = [#tpu.dimension_semantics<parallel>, #tpu.dimension_semantics<arbitrary>], iteration_bounds = array<i64: 2, 1>, scalar_prefetch = 0 : i64, scratch_operands = 0 : i64, tpu.core_type = #tpu.core_type<tc>, window_params = [{transform_indices = @transform_0, window_bounds = array<i64: 1, 4, 256>}, {transform_indices = @transform_1, window_bounds = array<i64: 1, 1, 256>}, {pipeline_mode = #tpu.pipeline_mode<synchronous>, transform_indices = @transform_2, window_bounds = array<i64: 4, 1>}, {transform_indices = @transform_3, window_bounds = array<i64: 1, 1, 256>}]} {
    %c0 = arith.constant 0 : index
    %c0_0 = arith.constant 0 : index
    %c0_1 = arith.constant 0 : index
    %0 = vector.load %arg2[%c0, %c0_0, %c0_1] : memref<1x4x256xf32, #tpu.memory_space<vmem>>, vector<1x4x256xf32>
    %1 = vector.shape_cast %0 : vector<1x4x256xf32> to vector<4x256xf32>
    %c0_2 = arith.constant 0 : index
    %c0_3 = arith.constant 0 : index
    %c0_4 = arith.constant 0 : index
    %2 = vector.load %arg3[%c0_2, %c0_3, %c0_4] : memref<1x1x256xi32, #tpu.memory_space<vmem>>, vector<1x1x256xi32>
    %3 = vector.shape_cast %2 : vector<1x1x256xi32> to vector<1x256xi32>
    %c0_5 = arith.constant 0 : index
    %c0_6 = arith.constant 0 : index
    %4 = vector.load %arg4[%c0_5, %c0_6] : memref<4x1xf32, #tpu.memory_space<vmem>>, vector<4x1xf32>
    %cst = arith.constant dense<0xFF800000> : vector<256xf32>
    %5 = vector.multi_reduction <maximumf>, %1, %cst [0] : vector<4x256xf32> to vector<256xf32>
    %6 = vector.shape_cast %5 : vector<256xf32> to vector<1x256xf32>
    %7 = vector.broadcast %6 : vector<1x256xf32> to vector<4x256xf32>
    %8 = arith.subf %1, %7 : vector<4x256xf32>
    %9 = math.exp %8 : vector<4x256xf32>
    %cst_7 = arith.constant dense<0.000000e+00> : vector<256xf32>
    %10 = vector.multi_reduction <add>, %9, %cst_7 [0] : vector<4x256xf32> to vector<256xf32>
    %11 = vector.shape_cast %10 : vector<256xf32> to vector<1x256xf32>
    %12 = tpu.iota {dimensions = array<i32: 0>} : vector<4x256xi32>
    %13 = vector.broadcast %3 : vector<1x256xi32> to vector<4x256xi32>
    %14 = arith.cmpi eq, %12, %13 : vector<4x256xi32>
    %15 = arith.extui %14 : vector<4x256xi1> to vector<4x256xi32>
    %16 = arith.sitofp %15 : vector<4x256xi32> to vector<4x256xf32>
    %17 = arith.mulf %8, %16 : vector<4x256xf32>
    %cst_8 = arith.constant dense<0.000000e+00> : vector<256xf32>
    %18 = vector.multi_reduction <add>, %17, %cst_8 [0] : vector<4x256xf32> to vector<256xf32>
    %19 = vector.shape_cast %18 : vector<256xf32> to vector<1x256xf32>
    %20 = arith.mulf %9, %16 : vector<4x256xf32>
    %cst_9 = arith.constant dense<0.000000e+00> : vector<256xf32>
    %21 = vector.multi_reduction <add>, %20, %cst_9 [0] : vector<4x256xf32> to vector<256xf32>
    %22 = vector.shape_cast %21 : vector<256xf32> to vector<1x256xf32>
    %23 = vector.broadcast %4 : vector<4x1xf32> to vector<4x256xf32>
    %24 = arith.mulf %23, %16 : vector<4x256xf32>
    %cst_10 = arith.constant dense<0.000000e+00> : vector<256xf32>
    %25 = vector.multi_reduction <add>, %24, %cst_10 [0] : vector<4x256xf32> to vector<256xf32>
    %26 = vector.shape_cast %25 : vector<256xf32> to vector<1x256xf32>
    %27 = math.log %11 : vector<1x256xf32>
    %28 = arith.subf %19, %27 : vector<1x256xf32>
    %29 = arith.divf %22, %11 : vector<1x256xf32>
    %cst_11 = arith.constant 1.000000e+00 : f32
    %30 = vector.broadcast %cst_11 : f32 to vector<1x256xf32>
    %31 = arith.subf %30, %29 : vector<1x256xf32>
    %32 = arith.mulf %31, %31 : vector<1x256xf32>
    %cst_12 = arith.constant 0.000000e+00 : f32
    %33 = vector.broadcast %cst_12 : f32 to vector<1x256xf32>
    %34 = arith.subf %33, %32 : vector<1x256xf32>
    %35 = arith.mulf %26, %28 : vector<1x256xf32>
    %36 = arith.mulf %34, %35 : vector<1x256xf32>
    %c0_i32 = arith.constant 0 : i32
    %37 = arith.cmpi eq, %arg1, %c0_i32 : i32
    %38 = arith.extui %37 : i1 to i32
    %c0_i32_13 = arith.constant 0 : i32
    %39 = arith.cmpi ne, %38, %c0_i32_13 : i32
    scf.if %39 {
      %cst_20 = arith.constant 0.000000e+00 : f32
      %44 = vector.broadcast %cst_20 : f32 to vector<1x1x256xf32>
      %c0_21 = arith.constant 0 : index
      %c0_22 = arith.constant 0 : index
      %c0_23 = arith.constant 0 : index
      %45 = vector.load %arg5[%c0_21, %c0_22, %c0_23] : memref<1x1x256xf32, #tpu.memory_space<vmem>>, vector<1x1x256xf32>
      tpu.vector_store %arg5[%c0_21, %c0_22, %c0_23], %44 {strides = array<i32>} : memref<1x1x256xf32, #tpu.memory_space<vmem>>, vector<1x1x256xf32>,
    } else {
    }
    %c0_14 = arith.constant 0 : index
    %c0_15 = arith.constant 0 : index
    %c0_16 = arith.constant 0 : index
    %40 = vector.load %arg5[%c0_14, %c0_15, %c0_16] : memref<1x1x256xf32, #tpu.memory_space<vmem>>, vector<1x1x256xf32>
    %41 = vector.shape_cast %36 : vector<1x256xf32> to vector<1x1x256xf32>
    %42 = arith.addf %40, %41 : vector<1x1x256xf32>
    %c0_17 = arith.constant 0 : index
    %c0_18 = arith.constant 0 : index
    %c0_19 = arith.constant 0 : index
    %43 = vector.load %arg5[%c0_17, %c0_18, %c0_19] : memref<1x1x256xf32, #tpu.memory_space<vmem>>, vector<1x1x256xf32>
    tpu.vector_store %arg5[%c0_17, %c0_18, %c0_19], %42 {strides = array<i32>} : memref<1x1x256xf32, #tpu.memory_space<vmem>>, vector<1x1x256xf32>,
    return
  }
  func.func @transform_0(%arg0: i32, %arg1: i32) -> (i32, i32, i32) {
    %c0_i32 = arith.constant 0 : i32
    %c0_i32_0 = arith.constant 0 : i32
    return %arg0, %c0_i32, %arg1 : i32, i32, i32
  }
  func.func @transform_1(%arg0: i32, %arg1: i32) -> (i32, i32, i32) {
    %c0_i32 = arith.constant 0 : i32
    %c0_i32_0 = arith.constant 0 : i32
    return %arg0, %c0_i32, %arg1 : i32, i32, i32
  }
  func.func @transform_2(%arg0: i32, %arg1: i32) -> (i32, i32) {
    %c0_i32 = arith.constant 0 : i32
    %c0_i32_0 = arith.constant 0 : i32
    %c0_i32_1 = arith.constant 0 : i32
    return %c0_i32, %c0_i32_0 : i32, i32
  }
  func.func @transform_3(%arg0: i32, %arg1: i32) -> (i32, i32, i32) {
    %c0_i32 = arith.constant 0 : i32
    %c0_i32_0 = arith.constant 0 : i32
    %c0_i32_1 = arith.constant 0 : i32
    return %arg0, %c0_i32, %c0_i32_0 : i32, i32, i32
  }
}

</mosaic_0001>

<bundles_post_ra>
// kernel: tpu_custom_call.1
= control target key start
LH: loop header
LB: loop body
LE: loop exit
PB: predicated region body
PF: predicated region fallthrough
CT: control target
= control target key end

     0   :  { %8 = vsyncpa [#allocation3], 0  ;;  %s938_s0 = inlined_call_operand.hbm [shape: f32[2,4,256], index: 0, kind: input, shape index: {}]   ;;  %s939_s1 = inlined_call_operand.vmem [shape: s32[2,1,256], index: 1, kind: input, shape index: {}]   ;;  %s940_s2 = inlined_call_operand.vmem [shape: f32[4,1], index: 2, kind: input, shape index: {}]   ;;  %s941_s3 = inlined_call_operand.hbm [shape: f32[2,1,256], index: 3, kind: output, shape index: {}]  }
   0x1   :  { %10 = vsyncpa [#allocation3 + $0x1], 0 }
   0x2   :  { %11 = vsyncpa [#allocation4], 0 }
   0x3   :  { %13 = vsyncpa [#allocation4 + $0x1], 0  ;;  %s756_s12 = smov 0   ;;  %s758_s13 = smov 0  }
   0x4   :  { %s760_s14 = smov 0   ;;  %s762_s15 = smov 0  }
   0x5   :  { %s764_s16 = smov 0   ;;  %s766_s17 = smov 0  }
   0x6 LB: > { %s524_s18 = sadd.s32 4294967295, %s729_s17   ;;  %s525_s19 = sadd.s32 4294967294, %s729_s17   ;;  %s729_s17 = sphi %s766_s17, %s19_s17   ;;  %s725_s16 = sphi %s764_s16, %s955_s16   ;;  %s721_s15 = sphi %s762_s15, %s954_s15   ;;  %s717_s14 = sphi %s760_s14, %s953_s14   ;;  %s713_s13 = sphi %s758_s13, %s952_s13   ;;  %s709_s12 = sphi %s756_s12, %s951_s12  }
   0x7   : > { %s31_s20 = sadd.s32 1, %s725_s16  ;;  %s40_s21 = sadd.s32 1, %s717_s14 }
   0x8   : > { %p33_p0 = scmp.ge.s32.totalorder %s31_s20, 2  ;;  %p47_p1 = scmp.ne.s32.totalorder %s717_s14, %s713_s13 }
   0x9   : > { %p48_p2 = scmp.eq.s32.totalorder %s729_s17, 0  ;;  %p53_p3 = scmp.ne.s32.totalorder %s713_s13, %s709_s12 }
   0xa   : > { %s957_s20 = smov (%p33_p0, %s31_s20), 0  ;;  %p54_p5 = scmp.eq.s32.totalorder %s524_s18, 0 }
   0xb   : > { %p797_p4 = por %p48_p2, %p47_p1  ;;  %s35_s23 = ssub.s32 %s725_s16, %s957_s20 }
   0xc   : > { %p126_p6 = scmp.eq.s32.totalorder %s524_s18, 1  ;;  %p38_p7 = scmp.eq.s32.totalorder %s35_s23, 0 }
   0xd   : > { %p803_p8 = por %p54_p5, %p53_p3  ;;  %p132_p10 = scmp.eq.s32.totalorder %s525_s19, 1 }
   0xe   : > { %p807_p9 = por %p126_p6, %p47_p1  ;;  %p556_p13 = scmp.lt.s32.totalorder %s729_s17, 2 }
   0xf   : > { %s812_s26 = scalar_select %p38_p7, %s717_s14, %s40_s21  }
  0x10   : > { %p814_p11 = por %p132_p10, %p53_p3  ;;  %s155_s28 = sand.u32 1, %s717_s14  }
  0x11   : > { %s528_s29 = sshll.u32 %s155_s28, 3  ;;  %s542_s30 = sshll.u32 %s725_s16, 7 }
  0x12   : > { %s945_s27 = scalar_select %p814_p11, 1, 0 }
  0x13   : > { %s167_s6 = scalar_lea.hbm %s938_s0, %s542_s30  ;;  %s159_s7 = scalar_lea.vmem [#allocation2], %s528_s29 }
  0x14   : > { %s169_s8 = sshll.u32 %s159_s7, 4  ;;  %p827_p0 = pnand %p556_p13, %p797_p4  ;;  %s170_s8 = int_to_ptr.vmem [resolvable:$true] %s169_s8 }
  0x15   : > { %p531_p1 = scmp.ge.s32.totalorder %s729_s17, 1  ;;  %p186_p2 = scmp.lt.s32.totalorder %s729_s17, 3 }
  0x16   : > { %s156_s10 = scalar_lea.sflag [#allocation3], %s155_s28  ;;  %p623_p3 = pneg %p827_p0 }
  0x17   : > { %s634_s11 = scalar_lea.vmem %s170_s8, 128  ;;  %s731_s18 = smov [#allocation2]  }
  0x18   : > { %p635_p5 = scmp.ne.s32.totalorder %s170_s8, %s634_s11  ;;  %s639_s19 = sshll.u32 %s731_s18, 4  ;;  %s640_s19 = int_to_ptr.vmem [resolvable:$false] %s639_s19 }
  0x19   : > { %s641_s21 = scalar_lea.vmem %s640_s19, 256  ;;  %p642_p10 = scmp.lt.s32.totalorder %s170_s8, %s640_s19 }
  0x1a   : > { %p637_p6 = pnand %p635_p5, %p623_p3  ;;  %p643_p12 = scmp.lt.s32.totalorder %s641_s21, %s634_s11 }
  0x1c   : > { %p638_p7 = pneg %p637_p6  ;;  %p644_p4 = por %p643_p12, %p642_p10 }
  0x1e   : > { %p645_p13 = pnand %p644_p4, %p638_p7 }
  0x20   : > { %648 = shalt.err (!%p645_p13)
}
  0x21   : > { %551 = dma.hbm_to_vmem [thread:$0]  (!%p827_p0), %s167_s6, 128, %s170_s8, %s156_s10  }
  0x22   : > { %p187_p11 = pnand %p531_p1, %p186_p2 }
  0x23   : > { %s842_s22 = sand.u32 (!%p187_p11), 1, %s713_s13  }
  0x24   : > { %190 = sbr.rel (%p187_p11) target bundleno = 208 (0xd0), region = 32  ;;  %s532_s23 = sshll.u32 (!%p187_p11), %s842_s22, 3 }
  0x25   : > { %s193_s28 = scalar_lea.sflag (!%p187_p11), [#allocation3], %s842_s22  ;;  %s196_s29 = scalar_lea.vmem (!%p187_p11), [#allocation2], %s532_s23 }
  0x29   : > { %700 = dma.done.wait (%p803_p8), %s193_s28, 128  }
  0x2a   : > { %702 = vsyncadd (%p803_p8), %s193_s28, 4294967168  ;;  %s533_s30 = sshll.u32 %s842_s22, 1  ;;  %p229_p12 = scmp.lt.s32.totalorder %s721_s15, 1  ;;  %v282_v0 = vlaneseq  ;;  %v732_v1 = vmov 0   ;;  %v733_v4 = vmov 0.0   ;;  %v237_v14 = vld [vmem:[%s196_s29] sm:$0xff] }
  0x2b   : > { %609 = vset.pattern.permute.xlu0 %v732_v1  ;;  %s859_s5 = scalar_lea.vmem [#allocation5], %s533_s30  ;;  %v239_v7 = vld [vmem:[%s940_s2] sm:$0xf]  ;;  %v241_v15 = vcombine.high %v237_v14, %v237_v14  ;;  %vm243_vm3 = vcmask 1043456   ;;  %s543_s11 = sshll.u32 %s721_s15, 5 }
  0x2c   : > { %s230_s4 = scalar_select %p229_p12, %s721_s15, 1  ;;  %v853_v2 = vshrl.u32 %v282_v0, 7  ;;  %vm855_vm0 = vcmp.lt.s32.totalorder %v282_v0, 256  ;;  %340 = vperm.xlu0 %609, %v239_v7   ;;  %v244_v16 = vsel %vm243_vm3, %v237_v14, -inf }
  0x2d   : > { %387 = vst.msk [vmem:[%s859_s5] sm:$0x3] %vm855_vm0, %v733_v4  ;;  %v251_v17 = vsel %vm243_vm3, %v241_v15, -inf  ;;  %v245_v18 = vrot.slane %v244_v16, 4  ;;  %s428_s18 = sshll.u32 %s859_s5, 4  ;;  %s426_s23 = scalar_lea.hbm %s941_s3, %s543_s11  ;;  %s429_s18 = int_to_ptr.vmem [resolvable:$true] %s428_s18 }
  0x2e   : > { %s534_s24 = sshll.u32 %s230_s4, 1  ;;  %v286_v5 = vsub.s32 0, %v853_v2  ;;  %v290_v6 = vsub.s32 1, %v853_v2  ;;  %v252_v19 = vrot.slane %v251_v17, 4  ;;  %s414_s28 = scalar_lea.sflag [#allocation4], %s842_s22 }
  0x2f   : > { %s235_s8 = scalar_lea.vmem %s939_s1, %s534_s24  ;;  %v246_v20 = vmax.f32 %v244_v16, %v245_v18  ;;  %s649_s29 = scalar_lea.vmem %s429_s18, 32 }
  0x30   : > { %v238_v8 = vld [vmem:[%s235_s8] sm:$0x3]  ;;  %v253_v21 = vmax.f32 %v251_v17, %v252_v19  ;;  %p650_p8 = scmp.ne.s32.totalorder %s429_s18, %s649_s29  ;;  %s735_s30 = smov [#allocation5]  }
  0x31   : > { %v287_v9 = vrot.slane %v238_v8, %v286_v5  ;;  %v291_v10 = vrot.slane %v238_v8, %v290_v6  ;;  %v247_v22 = vrot.slane %v246_v20, 2  ;;  %s653_s4 = sshll.u32 %s735_s30, 4  ;;  %s654_s4 = int_to_ptr.vmem [resolvable:$false] %s653_s4 }
  0x32   : > { %v254_v23 = vrot.slane %v253_v21, 2  ;;  %p651_p11 = pnand %p650_p8, %p807_p9  ;;  %s655_s15 = scalar_lea.vmem %s654_s4, 64 }
  0x33   : > { %vm292_vm1 = vcmp.eq.s32.totalorder %v853_v2, %v287_v9  ;;  %vm293_vm2 = vcmp.eq.s32.totalorder %v853_v2, %v291_v10  ;;  %v248_v24 = vmax.f32 %v246_v20, %v247_v22  ;;  %p656_p1 = scmp.lt.s32.totalorder %s429_s18, %s654_s4  ;;  %p657_p2 = scmp.lt.s32.totalorder %s655_s15, %s649_s29 }
  0x34   : > { %v874_v11 = vsel %vm292_vm1, 1.0, %v733_v4  ;;  %v876_v12 = vsel %vm293_vm2, 1.0, %v733_v4  ;;  %v255_v25 = vmax.f32 %v253_v21, %v254_v23  ;;  %p652_p0 = pneg %p651_p11 }
  0x35   : > { %v300_v13 = vcombine.low %v874_v11, %v876_v12  ;;  %v249_v26 = vrot.slane %v248_v24, 1  ;;  %p658_p3 = por %p657_p2, %p656_p1 }
  0x36   : > { %v256_v27 = vrot.slane %v255_v25, 1 }
  0x37   : > { %v250_v28 = vmax.f32 %v248_v24, %v249_v26  ;;  %p659_p5 = pnand %p658_p3, %p652_p0 }
  0x38   : > { %v257_v29 = vmax.f32 %v255_v25, %v256_v27 }
  0x3a   : > { %v260_v30 = vcombine.low %v250_v28, %v257_v29 }
  0x3c   : > { %v262_v31 = vsub.f32 %v237_v14, %v260_v30 }
  0x3e   : > { %v263_v32 = vmul.f32 1.442695, %v262_v31  ;;  %v302_v49 = vmul.f32 %v300_v13, %v262_v31 }
  0x40   : > { %611 = vpow2.f32 %v263_v32  ;;  %v304_v54 = vcombine.high %v302_v49, %v302_v49  ;;  %v306_v59 = vsel %vm243_vm3, %v302_v49, 0.0 }
  0x41   : > { %v307_v63 = vrot.slane %v306_v59, 4 }
  0x42   : > { %v313_v60 = vsel %vm243_vm3, %v304_v54, 0.0 }
  0x43   : > { %v314_v0 = vrot.slane %v313_v60, 4  ;;  %v308_v5 = vadd.f32 %v307_v63, %v306_v59 }
  0x45   : > { %v315_v6 = vadd.f32 %v314_v0, %v313_v60  ;;  %v309_v9 = vrot.slane %v308_v5, 2 }
  0x47   : > { %v316_v10 = vrot.slane %v315_v6, 2  ;;  %v310_v17 = vadd.f32 %v309_v9, %v308_v5 }
  0x49   : > { %v317_v18 = vadd.f32 %v316_v10, %v315_v6  ;;  %v311_v24 = vrot.slane %v310_v17, 1 }
  0x4b   : > { %v318_v25 = vrot.slane %v317_v18, 1 }
  0x4d   : > { %v612_v33 = vpop.eup %611 }
  0x4e   : > { %v266_v34 = vcombine.high %v612_v33, %v612_v33  ;;  %v268_v35 = vsel %vm243_vm3, %v612_v33, 0.0  ;;  %v320_v41 = vmul.f32 %v612_v33, %v300_v13 }
  0x4f   : > { %v269_v37 = vrot.slane %v268_v35, 4 }
  0x50   : > { %v275_v36 = vsel %vm243_vm3, %v266_v34, 0.0  ;;  %v322_v44 = vcombine.high %v320_v41, %v320_v41  ;;  %v324_v47 = vsel %vm243_vm3, %v320_v41, 0.0 }
  0x51   : > { %v276_v38 = vrot.slane %v275_v36, 4  ;;  %v270_v39 = vadd.f32 %v269_v37, %v268_v35  ;;  %v325_v52 = vrot.slane %v324_v47, 4 }
  0x52   : > { %v331_v48 = vsel %vm243_vm3, %v322_v44, 0.0 }
  0x53   : > { %v277_v40 = vadd.f32 %v276_v38, %v275_v36  ;;  %v271_v42 = vrot.slane %v270_v39, 2  ;;  %v332_v53 = vrot.slane %v331_v48, 4  ;;  %v326_v57 = vadd.f32 %v325_v52, %v324_v47 }
  0x54   : > { %v312_v36 = vadd.f32 %v311_v24, %v310_v17 }
  0x55   : > { %v278_v43 = vrot.slane %v277_v40, 2  ;;  %v272_v45 = vadd.f32 %v271_v42, %v270_v39  ;;  %v333_v58 = vadd.f32 %v332_v53, %v331_v48  ;;  %v327_v61 = vrot.slane %v326_v57, 2 }
  0x57   : > { %v279_v46 = vadd.f32 %v278_v43, %v277_v40  ;;  %v273_v50 = vrot.slane %v272_v45, 1  ;;  %v334_v62 = vrot.slane %v333_v58, 2  ;;  %v328_v1 = vadd.f32 %v327_v61, %v326_v57 }
  0x58   : > { %v734_v40 = vmov 1966171168  }
  0x59   : > { %v280_v51 = vrot.slane %v279_v46, 1  ;;  %v274_v55 = vadd.f32 %v273_v50, %v272_v45  ;;  %v335_v4 = vadd.f32 %v334_v62, %v333_v58  ;;  %v329_v7 = vrot.slane %v328_v1, 1  ;;  %v388_v62 = vld [vmem:[%s859_s5] sm:$0x3] }
  0x5a   : > { %v393_v41 = vunpack.c.l.s4 %v734_v40 }
  0x5b   : > { %v281_v56 = vadd.f32 %v280_v51, %v279_v46  ;;  %613 = vrcp.f32 %v274_v55  ;;  %v336_v8 = vrot.slane %v335_v4, 1  ;;  %v330_v14 = vadd.f32 %v329_v7, %v328_v1 }
  0x5c   : > { %v394_v50 = vunpack.c.0.s8 %v393_v41 }
  0x5d   : > { %615 = vrcp.f32 %v281_v56  ;;  %v337_v15 = vadd.f32 %v336_v8, %v335_v4 }
  0x5e   : > { %617 = vlog2.f32 %v274_v55  ;;  %v397_v57 = vsub.s32 %v394_v50, %v853_v2 }
  0x5f   : > { %619 = vlog2.f32 %v281_v56 }
  0x68   : > { %v614_v13 = vpop.eup %613 }
  0x69   : > { %v366_v22 = vmul.f32 %v614_v13, %v330_v14 }
  0x6a   : > { %v616_v16 = vpop.eup %615 }
  0x6b   : > { %v368_v23 = vmul.f32 %v616_v16, %v337_v15  ;;  %v618_v28 = vpop.eup %617  ;;  %v369_v34 = vsub.f32 1.0, %v366_v22 }
  0x6c   : > { %v620_v31 = vpop.eup %619  ;;  %v360_v38 = vmul.f32 0.6931472, %v618_v28 }
  0x6d   : > { %v370_v35 = vsub.f32 1.0, %v368_v23  ;;  %v362_v39 = vmul.f32 0.6931472, %v620_v31  ;;  %v371_v44 = vmul.f32 %v369_v34, %v369_v34 }
  0x6e   : > { %v363_v48 = vsub.f32 %v312_v36, %v360_v38 }
  0x6f   : > { %v372_v45 = vmul.f32 %v370_v35, %v370_v35  ;;  %v373_v53 = vsub.f32 0.0, %v371_v44 }
  0x71   : > { %v374_v54 = vsub.f32 0.0, %v372_v45 }
  0xa7   : > { %v341_v19 = vpop.permute.xlu0 %340 }
  0xa8   : > { %v343_v20 = vmul.f32 %v874_v11, %v341_v19  ;;  %v344_v21 = vmul.f32 %v876_v12, %v341_v19  ;;  %v319_v11 = vadd.f32 %v318_v25, %v317_v18 }
  0xaa   : > { %v345_v26 = vsel %vm243_vm3, %v343_v20, 0.0  ;;  %v352_v27 = vsel %vm243_vm3, %v344_v21, 0.0  ;;  %v364_v49 = vsub.f32 %v319_v11, %v362_v39 }
  0xab   : > { %v346_v29 = vrot.slane %v345_v26, 4  ;;  %v353_v30 = vrot.slane %v352_v27, 4 }
  0xad   : > { %v347_v32 = vadd.f32 %v346_v29, %v345_v26  ;;  %v354_v33 = vadd.f32 %v353_v30, %v352_v27 }
  0xaf   : > { %v348_v37 = vrot.slane %v347_v32, 2  ;;  %v355_v12 = vrot.slane %v354_v33, 2 }
  0xb1   : > { %v349_v42 = vadd.f32 %v348_v37, %v347_v32  ;;  %v356_v43 = vadd.f32 %v355_v12, %v354_v33 }
  0xb3   : > { %v350_v46 = vrot.slane %v349_v42, 1  ;;  %v357_v47 = vrot.slane %v356_v43, 1 }
  0xb5   : > { %v351_v51 = vadd.f32 %v350_v46, %v349_v42  ;;  %v358_v52 = vadd.f32 %v357_v47, %v356_v43 }
  0xb7   : > { %v375_v55 = vmul.f32 %v363_v48, %v351_v51  ;;  %v376_v56 = vmul.f32 %v364_v49, %v358_v52 }
  0xb9   : > { %v377_v58 = vmul.f32 %v375_v55, %v373_v53  ;;  %v378_v59 = vmul.f32 %v376_v56, %v374_v54 }
  0xbb   : > { %v391_v60 = vcombine.low %v377_v58, %v378_v59 }
  0xbd   : > { %v398_v61 = vrot.slane %v391_v60, %v397_v57 }
  0xbf   : > { %v405_v63 = vrot.slane %v398_v61, %v397_v57 }
  0xc1   : > { %v407_v0 = vadd.f32 %v405_v63, %v388_v62 }
  0xc3   : > { %412 = vst.msk [vmem:[%s859_s5] sm:$0x3] %vm855_vm0, %v407_v0 }
  0xc4   : > { %662 = shalt.err (!%p659_p5)
}
  0xc5   : > { %s663_s24 = scalar_lea.hbm %s426_s23, 32  ;;  %s667_s6 = scalar_lea.hbm %s941_s3, 64 }
  0xc6   : > { %p664_p6 = scmp.ne.s32.totalorder %s426_s23, %s663_s24  ;;  %p668_p4 = scmp.lt.s32.totalorder %s426_s23, %s941_s3 }
  0xc7   : > { %p669_p13 = scmp.lt.s32.totalorder %s667_s6, %s663_s24 }
  0xc8   : > { %p665_p7 = pnand %p664_p6, %p807_p9 }
  0xc9   : > { %p670_p12 = por %p669_p13, %p668_p4 }
  0xca   : > { %p666_p10 = pneg %p665_p7 }
  0xcc   : > { %p671_p8 = pnand %p670_p12, %p666_p10 }
  0xce   : > { %674 = shalt.err (!%p671_p8)
}
  0xcf   : > { %546 = dma.vmem_to_hbm [thread:$0]  (%p807_p9), %s429_s18, 32, %s426_s23, %s414_s28  }
  0xd0 PF: > { %s440_s9 = sand.u32 1, %s709_s12   ;;  %p949_p11 = scmp.ne.s32.totalorder %s945_s27, 0 }
  0xd1   : > { %p950_p0 = scmp.ge.s32.totalorder %s729_s17, 2  ;;  %s441_s10 = scalar_lea.sflag [#allocation4], %s440_s9 }
  0xd3   : > { %p553_p1 = pnand %p950_p0, %p949_p11 }
  0xd5   : > { %p554_p2 = pneg %p553_p1 }
  0xd7   : > { %704 = dma.done.wait (%p554_p2), %s441_s10, 32  }
  0xd8   : > { %706 = vsyncadd (%p554_p2), %s441_s10, 4294967264  ;;  %s19_s17 = sadd.s32 1, %s729_s17   ;;  %s951_s12 = smov %s713_s13 }
  0xd9   : > { %p16_p3 = scmp.ge.s32.totalorder %s19_s17, 4   ;;  %s952_s13 = smov %s717_s14 }
  0xda   : > { %s953_s14 = smov %s812_s26  ;;  %s954_s15 = smov %s725_s16 }
  0xdb   : > { %s955_s16 = smov %s957_s20  ;;  %18 = sbr.rel (!%p16_p3) target bundleno = 6 (0x6), region = 84 }
  0xe0   :  { %446 = vsyncpa [#allocation3], 1 }
  0xe1   :  { %448 = vsyncpa [#allocation3 + $0x1], 1 }
  0xe2   :  { %449 = vsyncpa [#allocation4], 1 }
  0xe3   :  { %451 = vsyncpa [#allocation4 + $0x1], 1 }

</bundles_post_ra>
